<compile_context>
chip_gen: v5e
topology: v5e:2x2
jax: 0.10.0
libtpu: 0.0.40
codegen_flags: <defaults>
</compile_context>

<pallas_src>
import functools

import jax
import jax.numpy as jnp
from jax.experimental import pallas as pl
from jax.experimental.pallas import tpu as pltpu

IGNORE_INDEX = 50256
_LANE = 128
_MAX_ROW_TILE = 256
_BLOCK_BYTES_SMALL = 8 * 1024 * 1024    # v7x (64 MiB VMEM per TC)
_BLOCK_BYTES_LARGE = 16 * 1024 * 1024   # v5e / v6e (128 MiB VMEM)

_cached_block_bytes = None


def _default_block_bytes():
    """Pick the per-block streaming budget from the chip's VMEM size (defensive)."""
    global _cached_block_bytes
    if _cached_block_bytes is None:
        bb = _BLOCK_BYTES_SMALL
        try:
            info = pltpu.get_tpu_info()
            vmem = getattr(info, "vmem_capacity_bytes", 0) or 0
            if vmem >= 100 * 1024 * 1024:      # 128 MiB parts -> larger blocks
                bb = _BLOCK_BYTES_LARGE
        except Exception:
            pass
        _cached_block_bytes = bb
    return _cached_block_bytes


def _round_up(x, m):
    return ((x + m - 1) // m) * m


def _ce_kernel(tgt_ref, logits_ref, loss_ref, m_sc, l_sc, t_sc, *, vocab_size):
    """Per-row online log-sum-exp + target-logit gather, accumulated over vocab tiles.

    Grid: (row_tiles, vocab_tiles). Vocab is the reduction axis (output block
    index constant along it -> accumulator pattern, finalized on the last tile).
    """
    j = pl.program_id(1)
    nv = pl.num_programs(1)
    tv = logits_ref.shape[1]

    @pl.when(j == 0)
    def _init():
        m_sc[...] = jnp.full_like(m_sc, -jnp.inf)
        l_sc[...] = jnp.zeros_like(l_sc)
        t_sc[...] = jnp.zeros_like(t_sc)

    x_raw = logits_ref[...]                                    # input dtype (bf16/f32)
    col = jax.lax.broadcasted_iota(jnp.int32, x_raw.shape, 1)  # loop-invariant iota

    # ---- target-logit gather ------------------------------------------------
    # One-hot select in the *input* dtype (exact: at most one nonzero per row
    # across the whole vocab), accumulate into f32.  OOB columns of a ragged
    # last tile can never be hit since targets < vocab_size.
    hit = col == (tgt_ref[...] - j * tv)
    t_sc[...] += jnp.sum(
        jnp.where(hit, x_raw, jnp.zeros((), x_raw.dtype)),
        axis=-1, keepdims=True,
    ).astype(jnp.float32)

    # ---- online log-sum-exp update -------------------------------------------
    def lse_update(xt):
        # Max in the input dtype (exact), upcast only for the exp/accumulate path.
        tile_max = xt.max(axis=-1, keepdims=True).astype(jnp.float32)
        m_prev = m_sc[...]
        m_new = jnp.maximum(m_prev, tile_max)
        alpha = jnp.exp(m_prev - m_new)
        p_sum = jnp.exp(xt.astype(jnp.float32) - m_new).sum(axis=-1, keepdims=True)
        l_sc[...] = alpha * l_sc[...] + p_sum
        m_sc[...] = m_new

    if vocab_size % tv != 0:
        # Only the last vocab tile is ragged: mask it there, run the cheap
        # unmasked path on every other tile.
        last = nv - 1

        @pl.when(j != last)
        def _full_tile():
            lse_update(x_raw)

        @pl.when(j == last)
        def _ragged_tile():
            limit = vocab_size - j * tv
            lse_update(jnp.where(col < limit, x_raw, -jnp.inf))
    else:
        lse_update(x_raw)

    @pl.when(j == nv - 1)
    def _finalize():
        # per-row NLL = logsumexp(logits) - logits[target]
        loss_ref[...] = (m_sc[...] + jnp.log(l_sc[...])) - t_sc[...]


def _pick_tiles(n_rows, vocab, itemsize, block_bytes):
    """Choose (row_tile, vocab_tile).

    Row tile: capped at 256, but split into >=2 tiles whenever N >= 16 so the
    "parallel" row axis can shard across both v7x TensorCores.
    Vocab tile: balanced across the minimal number of tiles that fit the block
    budget (lane-aligned) so the ragged last tile carries almost no padded work.
    """
    if n_rows > _MAX_ROW_TILE:
        row_tile = _MAX_ROW_TILE
    elif n_rows >= 16:
        row_tile = _round_up(pl.cdiv(n_rows, 2), 8)
    else:
        row_tile = n_rows                      # tiny shapes: full-extent block

    cap = max(_LANE, (block_bytes // (row_tile * itemsize)) // _LANE * _LANE)
    if vocab <= cap:
        vocab_tile = vocab                     # single tile (full extent)
    else:
        n_vt = pl.cdiv(vocab, cap)
        vocab_tile = min(cap, _round_up(pl.cdiv(vocab, n_vt), _LANE))
    return row_tile, vocab_tile


@functools.partial(jax.jit, static_argnames=("block_bytes",))
def gpt2_loss(logits, targets, *, block_bytes=None):
    """Equivalent of F.cross_entropy(logits.view(-1, V), targets.view(-1),
    ignore_index=50256) — scalar mean over non-ignored tokens.

    Note: if every target is IGNORE_INDEX this returns NaN (0/0), matching
    PyTorch's mean-reduction behavior.
    """
    B, T, V = logits.shape
    N = B * T
    if block_bytes is None:
        block_bytes = _default_block_bytes()

    # Free reshape only: no dtype cast, no padding of the big logits slab.
    x = logits.reshape(N, V)
    t = targets.reshape(N, 1).astype(jnp.int32)

    row_tile, vocab_tile = _pick_tiles(N, V, x.dtype.itemsize, block_bytes)
    grid = (pl.cdiv(N, row_tile), pl.cdiv(V, vocab_tile))

    block_sz = row_tile * vocab_tile * x.dtype.itemsize
    vmem_limit = min(2 * block_sz + (8 << 20), 96 * 1024 * 1024)

    per_row = pl.pallas_call(
        functools.partial(_ce_kernel, vocab_size=V),
        out_shape=jax.ShapeDtypeStruct((N, 1), jnp.float32),
        grid_spec=pltpu.PrefetchScalarGridSpec(
            num_scalar_prefetch=0,
            grid=grid,
            in_specs=[
                pl.BlockSpec((row_tile, 1), lambda i, j: (i, 0)),            # targets
                pl.BlockSpec((row_tile, vocab_tile), lambda i, j: (i, j)),   # logits
            ],
            out_specs=pl.BlockSpec((row_tile, 1), lambda i, j: (i, 0)),      # per-row NLL
            scratch_shapes=[
                pltpu.VMEM((row_tile, 1), jnp.float32),  # running max
                pltpu.VMEM((row_tile, 1), jnp.float32),  # running sum-exp
                pltpu.VMEM((row_tile, 1), jnp.float32),  # gathered target logit
            ],
        ),
        compiler_params=pltpu.CompilerParams(
            dimension_semantics=("parallel", "arbitrary"),
            vmem_limit_bytes=vmem_limit,
        ),
    )(t, x)

    # Glue: tiny masked mean over non-ignored tokens, stays in plain JAX.
    valid = targets.reshape(-1) != IGNORE_INDEX
    total = jnp.sum(jnp.where(valid, per_row[:, 0], 0.0))
    count = jnp.sum(valid.astype(jnp.float32))
    return total / count


def _reference_loss(logits, targets):
    """Pure-JAX reference of F.cross_entropy(..., ignore_index=50256)."""
    V = logits.shape[-1]
    x = logits.reshape(-1, V).astype(jnp.float32)
    t = targets.reshape(-1)
    lse = jax.nn.logsumexp(x, axis=-1)
    safe_t = jnp.clip(jnp.where(t == IGNORE_INDEX, 0, t), 0, V - 1).astype(jnp.int32)
    tgt_logit = jnp.take_along_axis(x, safe_t[:, None], axis=-1)[:, 0]
    nll = lse - tgt_logit
    valid = (t != IGNORE_INDEX).astype(jnp.float32)
    return jnp.sum(nll * valid) / jnp.sum(valid)


if __name__ == "__main__":
    key = jax.random.PRNGKey(0)
    k1, k2 = jax.random.split(key)

    # 1) Primary small-shape check (f32 logits, default blocks, 2 row tiles).
    B, T, V = 2, 8, 256
    logits = jax.random.normal(k1, (B, T, V), dtype=jnp.float32)
    targets = jax.random.randint(k2, (B, T), 0, V, dtype=jnp.int32)
    targets = targets.at[0, 0].set(IGNORE_INDEX)   # exercise ignore_index
    targets = targets.at[1, 5].set(IGNORE_INDEX)
    loss = jax.block_until_ready(gpt2_loss(logits, targets))
    ref = jax.block_until_ready(_reference_loss(logits, targets))
    assert jnp.allclose(loss, ref, atol=1e-5, rtol=1e-5), (loss, ref)

    # 2) Ragged row tile (N=260 > 256), single vocab tile.
    k3, k4 = jax.random.split(k1)
    B2, T2, V2 = 2, 130, 300
    logits2 = jax.random.normal(k3, (B2, T2, V2), dtype=jnp.float32)
    targets2 = jax.random.randint(k4, (B2, T2), 0, V2, dtype=jnp.int32)
    targets2 = targets2.at[0, 3].set(IGNORE_INDEX)
    loss2 = jax.block_until_ready(gpt2_loss(logits2, targets2))
    ref2 = jax.block_until_ready(_reference_loss(logits2, targets2))
    assert jnp.allclose(loss2, ref2, atol=1e-4, rtol=1e-4), (loss2, ref2)

    # 3) Force small blocks -> 3 vocab tiles of 128 with a ragged last tile:
    #    exercises the balanced-tile picker, multi-tile LSE accumulation and
    #    the last-tile-only -inf mask.
    loss3 = jax.block_until_ready(gpt2_loss(logits2, targets2, block_bytes=131072))
    assert jnp.allclose(loss3, ref2, atol=1e-4, rtol=1e-4), (loss3, ref2)

    # 4) bf16 logits stay bf16 in HBM (max / target-select run in bf16), default blocks.
    logits_bf = logits.astype(jnp.bfloat16)
    loss4 = jax.block_until_ready(gpt2_loss(logits_bf, targets))
    ref4 = jax.block_until_ready(_reference_loss(logits_bf.astype(jnp.float32), targets))
    assert jnp.allclose(loss4, ref4, atol=2e-4, rtol=2e-4), (loss4, ref4)

    # 5) bf16 + forced multi-tile (2 vocab tiles of 128, no ragged).
    loss5 = jax.block_until_ready(gpt2_loss(logits_bf, targets, block_bytes=2048))
    assert jnp.allclose(loss5, ref4, atol=2e-4, rtol=2e-4), (loss5, ref4)

    # 6) bf16 + ragged last vocab tile (V=300, tile=256).
    logits2_bf = logits2.astype(jnp.bfloat16)
    ref6 = jax.block_until_ready(_reference_loss(logits2_bf.astype(jnp.float32), targets2))
    loss6 = jax.block_until_ready(gpt2_loss(logits2_bf, targets2, block_bytes=131072))
    assert jnp.allclose(loss6, ref6, atol=2e-4, rtol=2e-4), (loss6, ref6)

    print("KERNEL_OK")
</pallas_src>

<mosaic_0001>
module attributes {stable_mosaic.version = 11 : i64} {
  func.func @_ce_kernel(%arg0: i32, %arg1: i32, %arg2: memref<8x1xi32, #tpu.memory_space<vmem>>, %arg3: memref<8x256xf32, #tpu.memory_space<vmem>>, %arg4: memref<8x1xf32, #tpu.memory_space<vmem>>, %arg5: memref<8x1xf32, #tpu.memory_space<vmem>>, %arg6: memref<8x1xf32, #tpu.memory_space<vmem>>, %arg7: memref<8x1xf32, #tpu.memory_space<vmem>>) attributes {dimension_semantics = [#tpu.dimension_semantics<parallel>, #tpu.dimension_semantics<arbitrary>], iteration_bounds = array<i64: 2, 1>, scalar_prefetch = 0 : i64, scratch_operands = 3 : i64, tpu.core_type = #tpu.core_type<tc>, window_params = [{transform_indices = @transform_0, window_bounds = array<i64: 8, 1>}, {transform_indices = @transform_1, window_bounds = array<i64: 8, 256>}, {transform_indices = @transform_2, window_bounds = array<i64: 8, 1>}]} {
    %c0_i32 = arith.constant 0 : i32
    %0 = arith.cmpi eq, %arg1, %c0_i32 : i32
    %1 = arith.extui %0 : i1 to i32
    %c0_i32_0 = arith.constant 0 : i32
    %2 = arith.cmpi ne, %1, %c0_i32_0 : i32
    scf.if %2 {
      %cst_21 = arith.constant 0xFF800000 : f32
      %37 = vector.broadcast %cst_21 : f32 to vector<8x1xf32>
      %c0_22 = arith.constant 0 : index
      %c0_23 = arith.constant 0 : index
      %38 = vector.load %arg5[%c0_22, %c0_23] : memref<8x1xf32, #tpu.memory_space<vmem>>, vector<8x1xf32>
      tpu.vector_store %arg5[%c0_22, %c0_23], %37 {strides = array<i32>} : memref<8x1xf32, #tpu.memory_space<vmem>>, vector<8x1xf32>,
      %cst_24 = arith.constant 0.000000e+00 : f32
      %39 = vector.broadcast %cst_24 : f32 to vector<8x1xf32>
      %c0_25 = arith.constant 0 : index
      %c0_26 = arith.constant 0 : index
      %40 = vector.load %arg6[%c0_25, %c0_26] : memref<8x1xf32, #tpu.memory_space<vmem>>, vector<8x1xf32>
      tpu.vector_store %arg6[%c0_25, %c0_26], %39 {strides = array<i32>} : memref<8x1xf32, #tpu.memory_space<vmem>>, vector<8x1xf32>,
      %cst_27 = arith.constant 0.000000e+00 : f32
      %41 = vector.broadcast %cst_27 : f32 to vector<8x1xf32>
      %c0_28 = arith.constant 0 : index
      %c0_29 = arith.constant 0 : index
      %42 = vector.load %arg7[%c0_28, %c0_29] : memref<8x1xf32, #tpu.memory_space<vmem>>, vector<8x1xf32>
      tpu.vector_store %arg7[%c0_28, %c0_29], %41 {strides = array<i32>} : memref<8x1xf32, #tpu.memory_space<vmem>>, vector<8x1xf32>,
    } else {
    }
    %c0 = arith.constant 0 : index
    %c0_1 = arith.constant 0 : index
    %3 = vector.load %arg3[%c0, %c0_1] : memref<8x256xf32, #tpu.memory_space<vmem>>, vector<8x256xf32>
    %4 = tpu.iota {dimensions = array<i32: 1>} : vector<8x256xi32>
    %c0_2 = arith.constant 0 : index
    %c0_3 = arith.constant 0 : index
    %5 = vector.load %arg2[%c0_2, %c0_3] : memref<8x1xi32, #tpu.memory_space<vmem>>, vector<8x1xi32>
    %c256_i32 = arith.constant 256 : i32
    %6 = arith.muli %arg1, %c256_i32 : i32
    %7 = vector.broadcast %6 : i32 to vector<8x1xi32>
    %8 = arith.subi %5, %7 : vector<8x1xi32>
    %9 = vector.broadcast %8 : vector<8x1xi32> to vector<8x256xi32>
    %10 = arith.cmpi eq, %4, %9 : vector<8x256xi32>
    %c0_4 = arith.constant 0 : index
    %c0_5 = arith.constant 0 : index
    %11 = vector.load %arg7[%c0_4, %c0_5] : memref<8x1xf32, #tpu.memory_space<vmem>>, vector<8x1xf32>
    %cst = arith.constant 0.000000e+00 : f32
    %12 = vector.broadcast %cst : f32 to vector<8x256xf32>
    %13 = arith.select %10, %3, %12 : vector<8x256xi1>, vector<8x256xf32>
    %cst_6 = arith.constant dense<0.000000e+00> : vector<8xf32>
    %14 = vector.multi_reduction <add>, %13, %cst_6 [1] : vector<8x256xf32> to vector<8xf32>
    %15 = vector.shape_cast %14 : vector<8xf32> to vector<8x1xf32>
    %16 = arith.addf %11, %15 : vector<8x1xf32>
    %c0_7 = arith.constant 0 : index
    %c0_8 = arith.constant 0 : index
    %17 = vector.load %arg7[%c0_7, %c0_8] : memref<8x1xf32, #tpu.memory_space<vmem>>, vector<8x1xf32>
    tpu.vector_store %arg7[%c0_7, %c0_8], %16 {strides = array<i32>} : memref<8x1xf32, #tpu.memory_space<vmem>>, vector<8x1xf32>,
    %cst_9 = arith.constant dense<0xFF800000> : vector<8xf32>
    %18 = vector.multi_reduction <maximumf>, %3, %cst_9 [1] : vector<8x256xf32> to vector<8xf32>
    %19 = vector.shape_cast %18 : vector<8xf32> to vector<8x1xf32>
    %c0_10 = arith.constant 0 : index
    %c0_11 = arith.constant 0 : index
    %20 = vector.load %arg5[%c0_10, %c0_11] : memref<8x1xf32, #tpu.memory_space<vmem>>, vector<8x1xf32>
    %21 = arith.maximumf %20, %19 : vector<8x1xf32>
    %22 = arith.subf %20, %21 : vector<8x1xf32>
    %23 = math.exp %22 : vector<8x1xf32>
    %24 = vector.broadcast %21 : vector<8x1xf32> to vector<8x256xf32>
    %25 = arith.subf %3, %24 : vector<8x256xf32>
    %26 = math.exp %25 : vector<8x256xf32>
    %cst_12 = arith.constant dense<0.000000e+00> : vector<8xf32>
    %27 = vector.multi_reduction <add>, %26, %cst_12 [1] : vector<8x256xf32> to vector<8xf32>
    %28 = vector.shape_cast %27 : vector<8xf32> to vector<8x1xf32>
    %c0_13 = arith.constant 0 : index
    %c0_14 = arith.constant 0 : index
    %29 = vector.load %arg6[%c0_13, %c0_14] : memref<8x1xf32, #tpu.memory_space<vmem>>, vector<8x1xf32>
    %30 = arith.mulf %23, %29 : vector<8x1xf32>
    %31 = arith.addf %30, %28 : vector<8x1xf32>
    %c0_15 = arith.constant 0 : index
    %c0_16 = arith.constant 0 : index
    %32 = vector.load %arg6[%c0_15, %c0_16] : memref<8x1xf32, #tpu.memory_space<vmem>>, vector<8x1xf32>
    tpu.vector_store %arg6[%c0_15, %c0_16], %31 {strides = array<i32>} : memref<8x1xf32, #tpu.memory_space<vmem>>, vector<8x1xf32>,
    %c0_17 = arith.constant 0 : index
    %c0_18 = arith.constant 0 : index
    %33 = vector.load %arg5[%c0_17, %c0_18] : memref<8x1xf32, #tpu.memory_space<vmem>>, vector<8x1xf32>
    tpu.vector_store %arg5[%c0_17, %c0_18], %21 {strides = array<i32>} : memref<8x1xf32, #tpu.memory_space<vmem>>, vector<8x1xf32>,
    %c0_i32_19 = arith.constant 0 : i32
    %34 = arith.cmpi eq, %arg1, %c0_i32_19 : i32
    %35 = arith.extui %34 : i1 to i32
    %c0_i32_20 = arith.constant 0 : i32
    %36 = arith.cmpi ne, %35, %c0_i32_20 : i32
    scf.if %36 {
      %c0_21 = arith.constant 0 : index
      %c0_22 = arith.constant 0 : index
      %37 = vector.load %arg5[%c0_21, %c0_22] : memref<8x1xf32, #tpu.memory_space<vmem>>, vector<8x1xf32>
      %c0_23 = arith.constant 0 : index
      %c0_24 = arith.constant 0 : index
      %38 = vector.load %arg6[%c0_23, %c0_24] : memref<8x1xf32, #tpu.memory_space<vmem>>, vector<8x1xf32>
      %39 = math.log %38 : vector<8x1xf32>
      %40 = arith.addf %37, %39 : vector<8x1xf32>
      %c0_25 = arith.constant 0 : index
      %c0_26 = arith.constant 0 : index
      %41 = vector.load %arg7[%c0_25, %c0_26] : memref<8x1xf32, #tpu.memory_space<vmem>>, vector<8x1xf32>
      %42 = arith.subf %40, %41 : vector<8x1xf32>
      %c0_27 = arith.constant 0 : index
      %c0_28 = arith.constant 0 : index
      %43 = vector.load %arg4[%c0_27, %c0_28] : memref<8x1xf32, #tpu.memory_space<vmem>>, vector<8x1xf32>
      tpu.vector_store %arg4[%c0_27, %c0_28], %42 {strides = array<i32>} : memref<8x1xf32, #tpu.memory_space<vmem>>, vector<8x1xf32>,
    } else {
    }
    return
  }
  func.func @transform_0(%arg0: i32, %arg1: i32) -> (i32, i32) {
    %c0_i32 = arith.constant 0 : i32
    %c0_i32_0 = arith.constant 0 : i32
    return %arg0, %c0_i32 : i32, i32
  }
  func.func @transform_1(%arg0: i32, %arg1: i32) -> (i32, i32) {
    %c0_i32 = arith.constant 0 : i32
    return %arg0, %arg1 : i32, i32
  }
  func.func @transform_2(%arg0: i32, %arg1: i32) -> (i32, i32) {
    %c0_i32 = arith.constant 0 : i32
    %c0_i32_0 = arith.constant 0 : i32
    return %arg0, %c0_i32 : i32, i32
  }
}

</mosaic_0001>

<bundles_post_ra>
// kernel: gpt2_loss.1
= control target key start
LH: loop header
LB: loop body
LE: loop exit
PB: predicated region body
PF: predicated region fallthrough
CT: control target
= control target key end

     0   :  { %7 = vsyncpa [#allocation6], 0  ;;  %s640_s0 = inlined_call_operand.vmem [shape: s32[16,1], index: 0, kind: input, shape index: {}]   ;;  %s641_s1 = inlined_call_operand.hbm [shape: f32[16,256], index: 1, kind: input, shape index: {}]   ;;  %s642_s2 = inlined_call_operand.vmem [shape: f32[16,1], index: 2, kind: output, shape index: {}]  }
   0x1   :  { %9 = vsyncpa [#allocation6 + $0x1], 0  ;;  %s535_s9 = smov 0   ;;  %s537_s10 = smov 0  }
   0x2   :  { %s539_s11 = smov 0   ;;  %s541_s12 = smov 0  }
   0x3   :  { %s543_s13 = smov 0   ;;  %s545_s14 = smov 0  }
   0x4 LB: > { %s353_s15 = sadd.s32 4294967295, %s515_s14   ;;  %s27_s16 = sadd.s32 1, %s511_s13  ;;  %s515_s14 = sphi %s545_s14, %s15_s14   ;;  %s511_s13 = sphi %s543_s13, %s649_s13   ;;  %s507_s12 = sphi %s541_s12, %s648_s12   ;;  %s503_s11 = sphi %s539_s11, %s647_s11   ;;  %s499_s10 = sphi %s537_s10, %s646_s10   ;;  %s495_s9 = sphi %s535_s9, %s645_s9  }
   0x5   : > { %p29_p0 = scmp.ge.s32.totalorder %s27_s16, 2  ;;  %s62_s17 = sadd.s32 1, %s503_s11 }
   0x6   : > { %p69_p1 = scmp.ne.s32.totalorder %s503_s11, %s499_s10  ;;  %p70_p2 = scmp.eq.s32.totalorder %s515_s14, 0 }
   0x7   : > { %s651_s16 = smov (%p29_p0, %s27_s16), 0  ;;  %p75_p4 = scmp.ne.s32.totalorder %s499_s10, %s495_s9 }
   0x8   : > { %p571_p3 = por %p70_p2, %p69_p1  ;;  %s57_s19 = ssub.s32 %s511_s13, %s651_s16 }
   0x9   : > { %p76_p5 = scmp.eq.s32.totalorder %s353_s15, 0  ;;  %p60_p6 = scmp.eq.s32.totalorder %s57_s19, 0 }
   0xa   : > { %p373_p8 = scmp.lt.s32.totalorder %s515_s14, 2  ;;  %s132_s22 = sand.u32 1, %s503_s11  }
   0xb   : > { %p578_p7 = por %p76_p5, %p75_p4  ;;  %s366_s23 = sshll.u32 %s511_s13, 4 }
   0xc   : > { %s584_s21 = scalar_select %p60_p6, %s503_s11, %s62_s17  }
   0xd   : > { %s357_s24 = sshll.u32 %s132_s22, 4  ;;  %s143_s27 = scalar_lea.hbm %s641_s1, %s366_s23 }
   0xe   : > { %s145_s28 = sshll.u32 %s143_s27, 4  ;;  %s136_s29 = scalar_lea.vmem [#allocation5], %s357_s24  ;;  %s146_s28 = int_to_ptr.hbm [resolvable:$true] %s145_s28 }
   0xf   : > { %s147_s30 = sshll.u32 %s136_s29, 4  ;;  %p370_p9 = pnand %p373_p8, %p571_p3  ;;  %s148_s30 = int_to_ptr.vmem [resolvable:$true] %s147_s30 }
  0x10   : > { %p360_p10 = scmp.ge.s32.totalorder %s515_s14, 1  ;;  %p152_p11 = scmp.lt.s32.totalorder %s515_s14, 3 }
  0x11   : > { %s133_s3 = scalar_lea.sflag [#allocation6], %s132_s22 }
  0x12   : > { %372 = dma.hbm_to_vmem [thread:$0]  (!%p370_p9), %s146_s28, 256, %s148_s30, %s133_s3  }
  0x13   : > { %p153_p12 = pnand %p360_p10, %p152_p11 }
  0x14   : > { %s158_s4 = sand.u32 (!%p153_p12), 1, %s499_s10  }
  0x15   : > { %156 = sbr.rel (%p153_p12) target bundleno = 417 (0x1a1), region = 28  ;;  %s361_s5 = sshll.u32 (!%p153_p12), %s158_s4, 4 }
  0x16   : > { %s159_s6 = scalar_lea.sflag (!%p153_p12), [#allocation6], %s158_s4  ;;  %s162_s7 = scalar_lea.vmem (!%p153_p12), [#allocation5], %s361_s5 }
  0x1a   : > { %490 = dma.done.wait (%p578_p7), %s159_s6, 256  }
  0x1b   : > { %492 = vsyncadd (%p578_p7), %s159_s6, 4294967040  ;;  %vm200_vm0 = vcmask 7168   ;;  %v517_v0 = vmov -inf   ;;  %v204_v1 = vld [vmem:[%s162_s7] sm:$0xff]  ;;  %v205_v2 = vld [vmem:[%s162_s7 + $0x8] sm:$0xff]  ;;  %p187_p13 = scmp.lt.s32.totalorder %s507_s12, 1  ;;  %v206_v11 = vlaneseq }
  0x1c   : > { %201 = vst.msk [vmem:[#allocation2] sm:$0xff] %vm200_vm0, %v517_v0  ;;  %v227_v3 = vmax.f32 %v204_v1, %v205_v2  ;;  %v518_v4 = vmov 0   ;;  %v519_v5 = vmov 0.0  }
  0x1d   : > { %s653_s12 = smov (!%p187_p13, %s507_s12), 1  ;;  %425 = vset.pattern.permute.xlu0 %v518_v4  ;;  %426 = vset.pattern.permute.xlu1 %v518_v4  ;;  %202 = vst.msk [vmem:[#allocation3] sm:$0xff] %vm200_vm0, %v519_v5  ;;  %v207_v13 = vand.u32 127, %v206_v11 }
  0x1e   : > { %228 = vmax.xlane.f32.xlu0 %v227_v3  ;;  %s362_s8 = sshll.u32 %s653_s12, 3  ;;  %203 = vst.msk [vmem:[#allocation4] sm:$0xff] %vm200_vm0, %v519_v5 }
  0x1f   : > { %s190_s17 = scalar_lea.vmem %s640_s0, %s362_s8  ;;  %v208_v14 = vadd.s32 128, %v207_v13  ;;  %s195_s20 = scalar_lea.vmem %s642_s2, %s362_s8 }
  0x20   : > { %v209_v6 = vld [vmem:[%s190_s17] sm:$0xff] }
  0x21   : > { %214 = vperm.xlu1 %426, %v209_v6  }
  0x23   : > { %v230_v7 = vld [vmem:[#allocation2] sm:$0xff] }
  0x24   : > { %v249_v31 = vld [vmem:[#allocation3] sm:$0xff] }
  0x25   : > { %v218_v27 = vld [vmem:[#allocation4] sm:$0xff] }
  0x91   : > { %v229_v8 = vpop.xlane.xlu0 %228 }
  0x92   : > { %v231_v9 = vmax.f32 %v230_v7, %v229_v8 }
  0x93   : > { %v215_v12 = vpop.permute.xlu1 %214 }
  0x94   : > { %v232_v10 = vsub.f32 %v230_v7, %v231_v9  ;;  %253 = vst.msk [vmem:[#allocation2] sm:$0xff] %vm200_vm0, %v231_v9  ;;  %237 = vperm.xlu0 %425, %v231_v9   ;;  %vm216_vm1 = vcmp.eq.s32.totalorder %v207_v13, %v215_v12  ;;  %vm217_vm2 = vcmp.eq.s32.totalorder %v208_v14, %v215_v12 }
  0x95   : > { %v219_v15 = vsel %vm216_vm1, %v204_v1, 0.0  ;;  %v220_v16 = vsel %vm217_vm2, %v205_v2, 0.0 }
  0x96   : > { %v221_v17 = vadd.f32 %v220_v16, %v219_v15  ;;  %v233_v29 = vmul.f32 1.442695, %v232_v10 }
  0x98   : > { %222 = vadd.xlane.f32.xlu2 %v221_v17 }
  0x9b   : > { %v257_v38 = vld [vmem:[#allocation2] sm:$0xff] }
 0x106   : > { %v238_v18 = vpop.permute.xlu0 %237 }
 0x107   : > { %v240_v19 = vsub.f32 %v204_v1, %v238_v18  ;;  %v241_v20 = vsub.f32 %v205_v2, %v238_v18 }
 0x109   : > { %v242_v21 = vmul.f32 1.442695, %v240_v19  ;;  %v244_v22 = vmul.f32 1.442695, %v241_v20 }
 0x10b   : > { %427 = vpow2.f32 %v242_v21  ;;  %v223_v26 = vpop.xlane.xlu2 %222 }
 0x10c   : > { %429 = vpow2.f32 %v244_v22  ;;  %v224_v28 = vadd.f32 %v223_v26, %v218_v27 }
 0x10d   : > { %431 = vpow2.f32 %v233_v29 }
 0x10e   : > { %226 = vst.msk [vmem:[#allocation4] sm:$0xff] %vm200_vm0, %v224_v28 }
 0x111   : > { %v428_v23 = vpop.eup %427 }
 0x112   : > { %v430_v24 = vpop.eup %429 }
 0x113   : > { %v246_v25 = vadd.f32 %v430_v24, %v428_v23  ;;  %v432_v30 = vpop.eup %431 }
 0x114   : > { %v250_v32 = vmul.f32 %v432_v30, %v249_v31 }
 0x115   : > { %247 = vadd.xlane.f32.xlu1 %v246_v25  ;;  %v262_v39 = vld [vmem:[#allocation4] sm:$0xff] }
 0x188   : > { %v248_v33 = vpop.xlane.xlu1 %247 }
 0x189   : > { %v251_v34 = vadd.f32 %v250_v32, %v248_v33 }
 0x18b   : > { %252 = vst.msk [vmem:[#allocation3] sm:$0xff] %vm200_vm0, %v251_v34 }
 0x192   : > { %v258_v35 = vld [vmem:[#allocation3] sm:$0xff] }
 0x193   : > { %433 = vlog2.f32 %v258_v35 }
 0x199   : > { %v434_v36 = vpop.eup %433 }
 0x19a   : > { %v260_v37 = vmul.f32 0.6931472, %v434_v36 }
 0x19c   : > { %v261_v40 = vadd.f32 %v260_v37, %v257_v38 }
 0x19e   : > { %v263_v41 = vsub.f32 %v261_v40, %v262_v39 }
 0x1a0   : > { %264 = vst.msk [vmem:[%s195_s20] sm:$0xff] %vm200_vm0, %v263_v41 }
 0x1a1 PF: > { %s15_s14 = sadd.s32 1, %s515_s14   ;;  %s645_s9 = smov %s499_s10 }
 0x1a2   : > { %p12_p0 = scmp.ge.s32.totalorder %s15_s14, 4   ;;  %s646_s10 = smov %s503_s11 }
 0x1a3   : > { %s647_s11 = smov %s584_s21  ;;  %s648_s12 = smov %s511_s13 }
 0x1a4   : > { %s649_s13 = smov %s651_s16  ;;  %14 = sbr.rel (!%p12_p0) target bundleno = 4 (0x4), region = 79 }
 0x1a9   :  { %284 = vsyncpa [#allocation6], 1 }
 0x1aa   :  { %286 = vsyncpa [#allocation6 + $0x1], 1 }

</bundles_post_ra>
